<compile_context>
chip_gen: v7x
topology: tpu7x:2x2x1
jax: 0.10.0
libtpu: 0.0.40
codegen_flags: <defaults>
</compile_context>

<pallas_src>
import functools

import jax
import jax.numpy as jnp
from jax.experimental import pallas as pl
from jax.experimental.pallas import tpu as pltpu

EPS = 1e-6


def _round_up(n, m):
    return ((n + m - 1) // m) * m


def _residual_kernel(x_ref, w_ref, b_ref, alpha_ref, beta_ref, o_ref, *, eps, feat):
    # x_ref: (TR, Fp) tile of rows; w_ref: (Fp, Fp); b/alpha/beta: (1, Fp)
    # `feat` is the real (unpadded) feature count; padded lanes of x/w/params are 0.
    x = x_ref[...].astype(jnp.float32)
    fp = x.shape[-1]  # lane-dense (padded) feature count

    # --- LayerNormalization (torch semantics: unbiased std, / (std + eps)) ---
    # Padded lanes of x are zero, so the sum over Fp equals the sum over feat.
    mean = jnp.sum(x, axis=-1, keepdims=True) * (1.0 / feat)
    diff = x - mean
    if feat != fp:
        # Mask padded lanes (they would contribute (-mean)^2 to the variance).
        lane = jax.lax.broadcasted_iota(jnp.int32, (1, fp), 1)
        diff = jnp.where(lane < feat, diff, 0.0)
    denom = float(max(feat - 1, 1))
    var_unbiased = jnp.sum(diff * diff, axis=-1, keepdims=True) * (1.0 / denom)
    std = jnp.sqrt(var_unbiased)
    # One reciprocal per row, reused as a multiply (approx=False keeps the result
    # numerically tight against the torch reference).
    inv = pl.reciprocal(std + eps, approx=False)
    normed = alpha_ref[...] * (diff * inv) + beta_ref[...]

    # --- sublayer: Linear(features, features), fused on the MXU ---
    # Cast lhs to the weight dtype (no-op for f32; bf16 weights -> bf16 MXU path),
    # accumulate in f32.
    sub = jnp.dot(normed.astype(w_ref.dtype), w_ref[...],
                  preferred_element_type=jnp.float32)
    sub = sub + b_ref[...].astype(jnp.float32)

    # --- dropout (eval mode = identity) + residual add ---
    o_ref[...] = (x + sub).astype(o_ref.dtype)


def residual_connection(x, w, b, alpha, beta, *, tile_rows=256):
    """x: (B, S, F). w: (F, F). Returns x + Linear(LayerNorm(x)).

    tile_rows: row-tile size. Use multiples of 256 on v6e/v7x (MXU M dim),
    multiples of 128 on v5e. It is auto-shrunk for tiny inputs and rows are
    padded so no divisibility of B*S is required.
    """
    B, S, F = x.shape
    rows = B * S

    # Lane-dense feature axis.
    Fp = _round_up(F, 128)

    # Row tile: multiple of 8 (f32 sublane); don't exceed (rounded-up) row count.
    tile_rows = max(8, min(int(tile_rows), _round_up(rows, 8)))
    tile_rows = _round_up(tile_rows, 8)
    rows_p = _round_up(rows, tile_rows)
    grid = rows_p // tile_rows

    # Zero-padded operands (zeros are neutral for LN stats / matmul / residual;
    # padded rows & lanes are cropped from the output). Skip the copies entirely
    # when already aligned so no extra wrapper-side HBM traffic is generated.
    x2d = x.reshape(rows, F)
    if rows_p != rows or Fp != F:
        x2d = jnp.zeros((rows_p, Fp), x.dtype).at[:rows, :F].set(x2d)
    if Fp != F:
        w_p = jnp.zeros((Fp, Fp), w.dtype).at[:F, :F].set(w)
        b_p = jnp.zeros((1, Fp), b.dtype).at[0, :F].set(b)
        alpha_p = jnp.zeros((1, Fp), alpha.dtype).at[0, :F].set(alpha)
        beta_p = jnp.zeros((1, Fp), beta.dtype).at[0, :F].set(beta)
    else:
        w_p = w
        b_p = b.reshape(1, Fp)
        alpha_p = alpha.reshape(1, Fp)
        beta_p = beta.reshape(1, Fp)

    # VMEM budget: (x tile + out tile) double-buffered + resident W/params,
    # plus headroom; clamped to 64 MiB (v7x per-TC physical VMEM).
    w_itemsize = jnp.dtype(w.dtype).itemsize
    tile_bytes = tile_rows * Fp * 4
    resident_bytes = Fp * Fp * w_itemsize + 3 * Fp * 4
    vmem_needed = 2 * 2 * tile_bytes + 2 * resident_bytes + (2 << 20)
    vmem_limit = int(min(max(vmem_needed, 16 << 20), 64 << 20))

    cost = pl.CostEstimate(
        flops=2 * rows_p * Fp * Fp + 10 * rows_p * Fp,
        transcendentals=rows_p,
        bytes_accessed=2 * rows_p * Fp * 4 + Fp * Fp * w_itemsize + 3 * Fp * 4,
    )

    kernel = functools.partial(_residual_kernel, eps=EPS, feat=F)

    out2d = pl.pallas_call(
        kernel,
        out_shape=jax.ShapeDtypeStruct((rows_p, Fp), x.dtype),
        grid_spec=pltpu.PrefetchScalarGridSpec(
            num_scalar_prefetch=0,
            grid=(grid,),
            in_specs=[
                pl.BlockSpec((tile_rows, Fp), lambda i: (i, 0)),  # x rows
                pl.BlockSpec((Fp, Fp), lambda i: (0, 0)),         # sublayer W (resident)
                pl.BlockSpec((1, Fp), lambda i: (0, 0)),          # sublayer b
                pl.BlockSpec((1, Fp), lambda i: (0, 0)),          # LN alpha
                pl.BlockSpec((1, Fp), lambda i: (0, 0)),          # LN bias
            ],
            out_specs=pl.BlockSpec((tile_rows, Fp), lambda i: (i, 0)),
        ),
        compiler_params=pltpu.CompilerParams(
            dimension_semantics=("parallel",),  # row axis shards across TCs (v7x megacore)
            vmem_limit_bytes=vmem_limit,
        ),
        cost_estimate=cost,
    )(x2d, w_p, b_p, alpha_p, beta_p)

    if rows_p != rows or Fp != F:
        out2d = out2d[:rows, :F]
    return out2d.reshape(B, S, F)


if __name__ == "__main__":
    B, S, F = 2, 8, 32

    key = jax.random.PRNGKey(0)
    kx, kw, kb = jax.random.split(key, 3)

    x = jax.random.normal(kx, (B, S, F), dtype=jnp.float32)

    # Deterministic parameter init (synthetic, not a checkpoint load):
    # LayerNormalization: alpha = ones, bias = zeros (as in __init__)
    alpha = jnp.ones((F,), dtype=jnp.float32)
    beta = jnp.zeros((F,), dtype=jnp.float32)
    # Sublayer (Linear features->features): small random weights, zero bias
    w = 0.02 * jax.random.normal(kw, (F, F), dtype=jnp.float32)
    b = jnp.zeros((F,), dtype=jnp.float32)

    # Pure-JAX reference (torch semantics).
    mean = jnp.mean(x, axis=-1, keepdims=True)
    std = jnp.std(x, axis=-1, keepdims=True, ddof=1)
    normed = alpha * (x - mean) / (std + EPS) + beta
    ref = x + (normed @ w + b)

    # f32 weights: tight check against the torch-semantics reference.
    out = residual_connection(x, w, b, alpha, beta)
    out = jax.block_until_ready(out)
    assert jnp.allclose(out, ref, atol=1e-4, rtol=1e-4), "f32 mismatch vs reference"

    # bf16 weights (the recommended v6e/v7x MXU path; f32 accumulation kept):
    out_bf16 = residual_connection(x, w.astype(jnp.bfloat16), b, alpha, beta)
    out_bf16 = jax.block_until_ready(out_bf16)
    assert jnp.allclose(out_bf16, ref, atol=1e-2, rtol=1e-2), "bf16 mismatch vs reference"

    print("KERNEL_OK")
</pallas_src>

<mosaic_0001>
module attributes {stable_mosaic.version = 11 : i64} {
  func.func @_residual_kernel(%arg0: i32, %arg1: memref<16x128xf32, #tpu.memory_space<vmem>>, %arg2: memref<128x128xf32, #tpu.memory_space<vmem>>, %arg3: memref<1x128xf32, #tpu.memory_space<vmem>>, %arg4: memref<1x128xf32, #tpu.memory_space<vmem>>, %arg5: memref<1x128xf32, #tpu.memory_space<vmem>>, %arg6: memref<16x128xf32, #tpu.memory_space<vmem>>) attributes {dimension_semantics = [#tpu.dimension_semantics<parallel>], iteration_bounds = array<i64: 1>, scalar_prefetch = 0 : i64, scratch_operands = 0 : i64, tpu.core_type = #tpu.core_type<tc>, window_params = [{transform_indices = @transform_0, window_bounds = array<i64: 16, 128>}, {pipeline_mode = #tpu.pipeline_mode<synchronous>, transform_indices = @transform_1, window_bounds = array<i64: 128, 128>}, {pipeline_mode = #tpu.pipeline_mode<synchronous>, transform_indices = @transform_2, window_bounds = array<i64: 1, 128>}, {pipeline_mode = #tpu.pipeline_mode<synchronous>, transform_indices = @transform_3, window_bounds = array<i64: 1, 128>}, {pipeline_mode = #tpu.pipeline_mode<synchronous>, transform_indices = @transform_4, window_bounds = array<i64: 1, 128>}, {transform_indices = @transform_5, window_bounds = array<i64: 16, 128>}]} {
    %c0 = arith.constant 0 : index
    %c0_0 = arith.constant 0 : index
    %0 = vector.load %arg1[%c0, %c0_0] : memref<16x128xf32, #tpu.memory_space<vmem>>, vector<16x128xf32>
    %cst = arith.constant dense<0.000000e+00> : vector<16xf32>
    %1 = vector.multi_reduction <add>, %0, %cst [1] : vector<16x128xf32> to vector<16xf32>
    %2 = vector.shape_cast %1 : vector<16xf32> to vector<16x1xf32>
    %cst_1 = arith.constant 3.125000e-02 : f32
    %3 = vector.broadcast %cst_1 : f32 to vector<16x1xf32>
    %4 = arith.mulf %2, %3 : vector<16x1xf32>
    %5 = vector.broadcast %4 : vector<16x1xf32> to vector<16x128xf32>
    %6 = arith.subf %0, %5 : vector<16x128xf32>
    %7 = tpu.iota {dimensions = array<i32: 1>} : vector<1x128xi32>
    %c32_i32 = arith.constant 32 : i32
    %8 = vector.broadcast %c32_i32 : i32 to vector<1x128xi32>
    %9 = arith.cmpi slt, %7, %8 : vector<1x128xi32>
    %cst_2 = arith.constant 0.000000e+00 : f32
    %10 = vector.shape_cast %9 : vector<1x128xi1> to vector<1x128xi1>
    %11 = vector.broadcast %10 : vector<1x128xi1> to vector<16x128xi1>
    %12 = vector.broadcast %cst_2 : f32 to vector<16x128xf32>
    %13 = arith.select %11, %6, %12 : vector<16x128xi1>, vector<16x128xf32>
    %14 = arith.mulf %13, %13 : vector<16x128xf32>
    %cst_3 = arith.constant dense<0.000000e+00> : vector<16xf32>
    %15 = vector.multi_reduction <add>, %14, %cst_3 [1] : vector<16x128xf32> to vector<16xf32>
    %16 = vector.shape_cast %15 : vector<16xf32> to vector<16x1xf32>
    %cst_4 = arith.constant 0.0322580636 : f32
    %17 = vector.broadcast %cst_4 : f32 to vector<16x1xf32>
    %18 = arith.mulf %16, %17 : vector<16x1xf32>
    %19 = math.sqrt %18 : vector<16x1xf32>
    %cst_5 = arith.constant 9.99999997E-7 : f32
    %20 = vector.broadcast %cst_5 : f32 to vector<16x1xf32>
    %21 = arith.addf %19, %20 : vector<16x1xf32>
    %22 = tpu.reciprocal %21 : vector<16x1xf32> -> vector<16x1xf32>
    %c0_6 = arith.constant 0 : index
    %c0_7 = arith.constant 0 : index
    %23 = vector.load %arg4[%c0_6, %c0_7] : memref<1x128xf32, #tpu.memory_space<vmem>>, vector<1x128xf32>
    %24 = vector.broadcast %22 : vector<16x1xf32> to vector<16x128xf32>
    %25 = arith.mulf %13, %24 : vector<16x128xf32>
    %26 = vector.broadcast %23 : vector<1x128xf32> to vector<16x128xf32>
    %27 = arith.mulf %26, %25 : vector<16x128xf32>
    %c0_8 = arith.constant 0 : index
    %c0_9 = arith.constant 0 : index
    %28 = vector.load %arg5[%c0_8, %c0_9] : memref<1x128xf32, #tpu.memory_space<vmem>>, vector<1x128xf32>
    %29 = vector.broadcast %28 : vector<1x128xf32> to vector<16x128xf32>
    %30 = arith.addf %27, %29 : vector<16x128xf32>
    %c0_10 = arith.constant 0 : index
    %c0_11 = arith.constant 0 : index
    %31 = vector.load %arg2[%c0_10, %c0_11] : memref<128x128xf32, #tpu.memory_space<vmem>>, vector<128x128xf32>
    %cst_12 = arith.constant dense<0.000000e+00> : vector<16x128xf32>
    %32 = tpu.matmul %30, %31, %cst_12 {dimension_numbers = #tpu.dot_dimension_numbers<[1], [0], [0], [1], [0, 0, 1, 1], [], []>} : vector<16x128xf32>, vector<128x128xf32>, vector<16x128xf32> -> vector<16x128xf32>
    %c0_13 = arith.constant 0 : index
    %c0_14 = arith.constant 0 : index
    %33 = vector.load %arg3[%c0_13, %c0_14] : memref<1x128xf32, #tpu.memory_space<vmem>>, vector<1x128xf32>
    %34 = vector.broadcast %33 : vector<1x128xf32> to vector<16x128xf32>
    %35 = arith.addf %32, %34 : vector<16x128xf32>
    %36 = arith.addf %0, %35 : vector<16x128xf32>
    %c0_15 = arith.constant 0 : index
    %c0_16 = arith.constant 0 : index
    %37 = vector.load %arg6[%c0_15, %c0_16] : memref<16x128xf32, #tpu.memory_space<vmem>>, vector<16x128xf32>
    tpu.vector_store %arg6[%c0_15, %c0_16], %36 {strides = array<i32>} : memref<16x128xf32, #tpu.memory_space<vmem>>, vector<16x128xf32>,
    return
  }
  func.func @transform_0(%arg0: i32) -> (i32, i32) {
    %c0_i32 = arith.constant 0 : i32
    %c0_i32_0 = arith.constant 0 : i32
    return %arg0, %c0_i32 : i32, i32
  }
  func.func @transform_1(%arg0: i32) -> (i32, i32) {
    %c0_i32 = arith.constant 0 : i32
    %c0_i32_0 = arith.constant 0 : i32
    %c0_i32_1 = arith.constant 0 : i32
    return %c0_i32, %c0_i32_0 : i32, i32
  }
  func.func @transform_2(%arg0: i32) -> (i32, i32) {
    %c0_i32 = arith.constant 0 : i32
    %c0_i32_0 = arith.constant 0 : i32
    %c0_i32_1 = arith.constant 0 : i32
    return %c0_i32, %c0_i32_0 : i32, i32
  }
  func.func @transform_3(%arg0: i32) -> (i32, i32) {
    %c0_i32 = arith.constant 0 : i32
    %c0_i32_0 = arith.constant 0 : i32
    %c0_i32_1 = arith.constant 0 : i32
    return %c0_i32, %c0_i32_0 : i32, i32
  }
  func.func @transform_4(%arg0: i32) -> (i32, i32) {
    %c0_i32 = arith.constant 0 : i32
    %c0_i32_0 = arith.constant 0 : i32
    %c0_i32_1 = arith.constant 0 : i32
    return %c0_i32, %c0_i32_0 : i32, i32
  }
  func.func @transform_5(%arg0: i32) -> (i32, i32) {
    %c0_i32 = arith.constant 0 : i32
    %c0_i32_0 = arith.constant 0 : i32
    return %arg0, %c0_i32 : i32, i32
  }
}

</mosaic_0001>

<bundles_post_ra>
// kernel: tpu_custom_call.1
= control target key start
LH: loop header
LB: loop body
LE: loop exit
PB: predicated region body
PF: predicated region fallthrough
CT: control target
= control target key end

     0   :  { %10 = vsyncpa [#allocation3], 0  ;;  %s514_s0 = inlined_call_operand.hbm [shape: f32[16,128], index: 0, kind: input, shape index: {}]   ;;  %s515_s1 = inlined_call_operand.hbm [shape: f32[128,128], index: 1, kind: input, shape index: {}]   ;;  %s516_s2 = inlined_call_operand.vmem [shape: f32[1,128], index: 2, kind: input, shape index: {}]   ;;  %s517_s3 = inlined_call_operand.vmem [shape: f32[1,128], index: 3, kind: input, shape index: {}]   ;;  %s518_s4 = inlined_call_operand.vmem [shape: f32[1,128], index: 4, kind: input, shape index: {}]   ;;  %s519_s5 = inlined_call_operand.hbm [shape: f32[16,128], index: 5, kind: output, shape index: {}]  }
   0x1   :  { %11 = vsyncpa [#allocation6], 0 }
   0x2   :  { %12 = vsyncpa [#allocation4], 0  ;;  %s405_s18 = smov [#allocation2]   ;;  %s333_s22 = scalar_lea.hbm %s514_s0, 256 }
   0x3   :  { %s18_s19 = sshll.u32 %s405_s18, 4  ;;  %p334_p0 = scmp.ne.s32.totalorder %s514_s0, %s333_s22  ;;  %s19_s19 = int_to_ptr.vmem [resolvable:$true] %s18_s19 }
   0x4   :  { %p337_p1 = scmp.lt.u32.totalorder %s333_s22, %s514_s0 }
   0x6   :  { %p339_p2 = pnand %p337_p1, %p334_p0 }
   0x8   :  { %342 = shalt.err (!%p339_p2)
}
   0x9   :  { %s343_s27 = scalar_lea.vmem %s19_s19, 256  ;;  %p348_p4 = scmp.lt.s32.totalorder %s19_s19, %s19_s19 }
   0xa   :  { %p344_p3 = scmp.ne.s32.totalorder %s19_s19, %s343_s27  ;;  %p349_p5 = scmp.lt.s32.totalorder %s343_s27, %s343_s27 }
   0xc   :  { %p350_p6 = por %p349_p5, %p348_p4 }
   0xe   :  { %p351_p7 = pnand %p350_p6, %p344_p3 }
  0x10   :  { %354 = shalt.err (!%p351_p7)
}
  0x11   :  { %s406_s28 = smov 128   ;;  %s407_s29 = smov 8  }
  0x12   :  { %24 = dma.hbm_to_vmem [thread:$0]  %s514_s0, 256, %s19_s19, [#allocation3], %s406_s28, %s406_s28, %s407_s29  }
  0x13   :  { %s408_s7 = smov [#allocation5]   ;;  %s355_s11 = scalar_lea.hbm %s515_s1, 2048 }
  0x14   :  { %s30_s8 = sshll.u32 %s408_s7, 4  ;;  %p356_p8 = scmp.ne.s32.totalorder %s515_s1, %s355_s11  ;;  %s31_s8 = int_to_ptr.vmem [resolvable:$true] %s30_s8 }
  0x15   :  { %p359_p9 = scmp.lt.u32.totalorder %s355_s11, %s515_s1 }
  0x17   :  { %p361_p10 = pnand %p359_p9, %p356_p8 }
  0x19   :  { %364 = shalt.err (!%p361_p10)
}
  0x1a   :  { %s365_s16 = scalar_lea.vmem %s31_s8, 2048  ;;  %p370_p12 = scmp.lt.s32.totalorder %s31_s8, %s31_s8 }
  0x1b   :  { %p366_p11 = scmp.ne.s32.totalorder %s31_s8, %s365_s16  ;;  %p371_p13 = scmp.lt.s32.totalorder %s365_s16, %s365_s16 }
  0x1d   :  { %p372_p0 = por %p371_p13, %p370_p12 }
  0x1f   :  { %p373_p1 = pnand %p372_p0, %p366_p11 }
  0x21   :  { %376 = shalt.err (!%p373_p1)
}
  0x22   :  { %36 = dma.hbm_to_vmem [thread:$0]  %s515_s1, 2048, %s31_s8, [#allocation6], %s406_s28, %s406_s28, %s407_s29  }
  0x23   :  { %399 = dma.done.wait [#allocation3], 256  }
  0x24   :  { %400 = vsyncadd [#allocation3], 4294967040 }
  0x25   :  { %401 = dma.done.wait [#allocation6], 2048  }
  0x26   :  { %402 = vsyncadd [#allocation6], 4294965248  ;;  %v470_v0 = vld [vmem:[#allocation2] sm:$0xff]  ;;  %v473_v1 = vld [vmem:[#allocation2 + $0x8] sm:$0xff]  ;;  %v59_v2 = vlaneseq }
  0x27   :  { %51 = vadd.xlane.f32.xlu0 %v470_v0  ;;  %v112_v14 = vld [vmem:[#allocation5] sm:$0xff]  ;;  %v113_v15 = vld [vmem:[#allocation5 + $0x8] sm:$0xff]  ;;  %v114_v17 = vld [vmem:[#allocation5 + $0x10] sm:$0xff] }
  0x28   :  { %v60_v3 = vand.u32 127, %v59_v2  ;;  %v288_v16 = vpack.c.bf16 %v113_v15, %v112_v14  ;;  %v115_v18 = vld [vmem:[#allocation5 + $0x18] sm:$0xff]  ;;  %v116_v20 = vld [vmem:[#allocation5 + $0x20] sm:$0xff]  ;;  %v117_v21 = vld [vmem:[#allocation5 + $0x28] sm:$0xff] }
  0x29   :  { %v292_v19 = vpack.c.bf16 %v115_v18, %v114_v17  ;;  %v296_v22 = vpack.c.bf16 %v117_v21, %v116_v20  ;;  %v118_v23 = vld [vmem:[#allocation5 + $0x30] sm:$0xff]  ;;  %v119_v24 = vld [vmem:[#allocation5 + $0x38] sm:$0xff]  ;;  %v120_v26 = vld [vmem:[#allocation5 + $0x40] sm:$0xff] }
  0x2a   :  { %vm61_vm0 = vcmp.lt.s32.totalorder %v60_v3, 32  ;;  %289 = vmatprep.subr.bf16.mxu0 %v288_v16  ;;  %v300_v25 = vpack.c.bf16 %v119_v24, %v118_v23  ;;  %v121_v27 = vld [vmem:[#allocation5 + $0x48] sm:$0xff]  ;;  %v122_v28 = vld [vmem:[#allocation5 + $0x50] sm:$0xff]  ;;  %v123_v30 = vld [vmem:[#allocation5 + $0x58] sm:$0xff] }
  0x2b   :  { %53 = vadd.xlane.f32.xlu0 %v473_v1  ;;  %291 = vmatpush3.bf16.msra.mxu0 %v288_v16  ;;  %v304_v29 = vpack.c.bf16 %v121_v27, %v120_v26  ;;  %v308_v31 = vpack.c.bf16 %v123_v30, %v122_v28  ;;  %v124_v32 = vld [vmem:[#allocation5 + $0x60] sm:$0xff]  ;;  %v125_v33 = vld [vmem:[#allocation5 + $0x68] sm:$0xff]  ;;  %v126_v35 = vld [vmem:[#allocation5 + $0x70] sm:$0xff] }
  0x2c   :  { %293 = vmatprep.subr.bf16.mxu0 %v292_v19  ;;  %v312_v34 = vpack.c.bf16 %v125_v33, %v124_v32  ;;  %v127_v36 = vld [vmem:[#allocation5 + $0x78] sm:$0xff]  ;;  %v232_v55 = vld [vmem:[%s517_s3] ss:$0 sm:$0xff]  ;;  %s409_s3 = smov [#allocation7]  }
  0x2d   :  { %v316_v37 = vpack.c.bf16 %v127_v36, %v126_v35  ;;  %v233_v57 = vld [vmem:[%s518_s4] ss:$0 sm:$0xff]  ;;  %s219_s23 = sshll.u32 %s409_s3, 4  ;;  %s220_s23 = int_to_ptr.vmem [resolvable:$true] %s219_s23 }
  0x2e   :  { %v234_v2 = vld [vmem:[%s516_s2] ss:$0 sm:$0xff]  ;;  %s377_s4 = scalar_lea.vmem %s220_s23, 256  ;;  %p382_p3 = scmp.lt.s32.totalorder %s220_s23, %s220_s23 }
  0x2f   :  { %295 = vmatpush3.bf16.msra.mxu0 %v292_v19  ;;  %p378_p2 = scmp.ne.s32.totalorder %s220_s23, %s377_s4  ;;  %p383_p4 = scmp.lt.s32.totalorder %s377_s4, %s377_s4 }
  0x30   :  { %297 = vmatprep.subr.bf16.mxu0 %v296_v22 }
  0x31   :  { %p384_p5 = por %p383_p4, %p382_p3 }
  0x33   :  { %299 = vmatpush3.bf16.msra.mxu0 %v296_v22  ;;  %p385_p6 = pnand %p384_p5, %p378_p2 }
  0x34   :  { %301 = vmatprep.subr.bf16.mxu0 %v300_v25 }
  0x37   :  { %303 = vmatpush3.bf16.msra.mxu0 %v300_v25 }
  0x38   :  { %305 = vmatprep.subr.bf16.mxu0 %v304_v29 }
  0x3b   :  { %307 = vmatpush3.bf16.msra.mxu0 %v304_v29 }
  0x3c   :  { %309 = vmatprep.subr.bf16.mxu0 %v308_v31 }
  0x3f   :  { %311 = vmatpush3.bf16.msra.mxu0 %v308_v31 }
  0x40   :  { %313 = vmatprep.subr.bf16.mxu0 %v312_v34 }
  0x43   :  { %315 = vmatpush3.bf16.msra.mxu0 %v312_v34 }
  0x44   :  { %317 = vmatprep.subr.bf16.mxu0 %v316_v37 }
  0x47   :  { %319 = vmatpush3.bf16.msra.mxu0 %v316_v37 }
  0xb4   :  { %v52_v4 = vpop.xlane.xlu0 %51 }
  0xb5   :  { %v55_v5 = vmul.f32 0.03125, %v52_v4 }
  0xb7   :  { %v57_v6 = vsub.f32 %v470_v0, %v55_v5 }
  0xb8   :  { %v54_v7 = vpop.xlane.xlu0 %53 }
  0xb9   :  { %v56_v8 = vmul.f32 0.03125, %v54_v7  ;;  %v477_v9 = vsel %vm61_vm0, %v57_v6, 0.0 }
  0xba   :  { %v66_v10 = vmul.f32 %v477_v9, %v477_v9 }
  0xbb   :  { %v58_v11 = vsub.f32 %v473_v1, %v56_v8 }
  0xbc   :  { %68 = vadd.xlane.f32.xlu1 %v66_v10 }
  0xbd   :  { %v482_v12 = vsel %vm61_vm0, %v58_v11, 0.0 }
  0xbe   :  { %v67_v13 = vmul.f32 %v482_v12, %v482_v12 }
  0xc0   :  { %70 = vadd.xlane.f32.xlu1 %v67_v13 }
 0x149   :  { %v69_v38 = vpop.xlane.xlu1 %68 }
 0x14a   :  { %v72_v39 = vmul.f32 0.032258064, %v69_v38 }
 0x14c   :  { %325 = vrsqrt.f32 %v72_v39  ;;  %vm76_vm1 = vcmp.eq.f32.partialorder %v72_v39, inf  ;;  %v79_v44 = vand.u32 2147483648, %v72_v39  ;;  %vm78_vm2 = vcmp.eq.f32.partialorder %v72_v39, 0.0 }
 0x14d   :  { %v71_v40 = vpop.xlane.xlu1 %70 }
 0x14e   :  { %v73_v41 = vmul.f32 0.032258064, %v71_v40 }
 0x150   :  { %327 = vrsqrt.f32 %v73_v41  ;;  %vm83_vm3 = vcmp.eq.f32.partialorder %v73_v41, inf  ;;  %v86_v50 = vand.u32 2147483648, %v73_v41  ;;  %vm85_vm4 = vcmp.eq.f32.partialorder %v73_v41, 0.0 }
 0x156   :  { %v326_v42 = vpop.eup %325 }
 0x157   :  { %v75_v43 = vmul.f32 %v326_v42, %v72_v39 }
 0x159   :  { %v77_v45 = vsel %vm76_vm1, %v72_v39, %v75_v43 }
 0x15a   :  { %v328_v46 = vpop.eup %327  ;;  %v80_v47 = vsel %vm78_vm2, %v79_v44, %v77_v45 }
 0x15b   :  { %v82_v48 = vmul.f32 %v328_v46, %v73_v41  ;;  %v88_v49 = vadd.f32 1e-06, %v80_v47 }
 0x15d   :  { %v84_v51 = vsel %vm83_vm3, %v73_v41, %v82_v48  ;;  %329 = vrcp.f32 %v88_v49 }
 0x15e   :  { %v87_v52 = vsel %vm85_vm4, %v86_v50, %v84_v51 }
 0x15f   :  { %v89_v53 = vadd.f32 1e-06, %v87_v52 }
 0x161   :  { %331 = vrcp.f32 %v89_v53 }
 0x167   :  { %v330_v54 = vpop.eup %329 }
 0x168   :  { %v93_v56 = vmul.f32 %v330_v54, %v477_v9 }
 0x16a   :  { %v101_v58 = vmul.f32 %v232_v55, %v93_v56 }
 0x16b   :  { %v332_v59 = vpop.eup %331 }
 0x16c   :  { %v94_v60 = vmul.f32 %v332_v59, %v482_v12  ;;  %v110_v61 = vadd.f32 %v233_v57, %v101_v58 }
 0x16e   :  { %v102_v62 = vmul.f32 %v232_v55, %v94_v60  ;;  %285 = vmatprep.mubr.f32.mxu0 %v110_v61 }
 0x170   :  { %v111_v63 = vadd.f32 %v233_v57, %v102_v62 }
 0x172   :  { %286 = vmatmul.mubr.f32.vlgmr.msra.gmra.mrb[0].mxu0 %v111_v63 }
 0x245   :  { %v287_v3 = vpop.f32.mrb[0].mxu0 }
 0x246   :  { %v207_v4 = vadd.f32 %v287_v3, %v234_v2  ;;  %v201_v5 = vpop.f32.mrb[1].mxu0 }
 0x247   :  { %v202_v6 = vadd.f32 %v234_v2, %v201_v5 }
 0x248   :  { %v211_v7 = vadd.f32 %v207_v4, %v473_v1 }
 0x249   :  { %v210_v8 = vadd.f32 %v202_v6, %v470_v0 }
 0x24a   :  { %213 = vst [vmem:[#allocation7 + $0x8] sm:$0xff] %v211_v7 }
 0x24b   :  { %212 = vst [vmem:[#allocation7] sm:$0xff] %v210_v8 }
 0x24c   :  { %388 = shalt.err (!%p385_p6)
}
 0x24d   :  { %s389_s25 = scalar_lea.hbm %s519_s5, 256 }
 0x24e   :  { %p390_p7 = scmp.ne.s32.totalorder %s519_s5, %s389_s25  ;;  %p393_p8 = scmp.lt.u32.totalorder %s389_s25, %s519_s5 }
 0x250   :  { %p395_p9 = pnand %p393_p8, %p390_p7 }
 0x252   :  { %398 = shalt.err (!%p395_p9)
}
 0x253   :  { %225 = dma.vmem_to_hbm [thread:$0]  %s220_s23, 256, %s519_s5, [#allocation4], %s406_s28, %s406_s28, %s407_s29  }
 0x254   :  { %403 = dma.done.wait [#allocation4], 256  }
 0x255   :  { %404 = vsyncadd [#allocation4], 4294967040 }
 0x256   :  { %229 = vsyncpa [#allocation3], 1 }
 0x257   :  { %230 = vsyncpa [#allocation6], 1 }
 0x258   :  { %231 = vsyncpa [#allocation4], 1 }

</bundles_post_ra>
